<compile_context>
chip_gen: v7x
topology: tpu7x:2x2x1
jax: 0.10.0
libtpu: 0.0.40
codegen_flags: <defaults>
</compile_context>

<pallas_src>
import math

import jax
import jax.numpy as jnp
from jax.experimental import pallas as pl
from jax.experimental.pallas import tpu as pltpu


def _round_up(n, m):
    return ((n + m - 1) // m) * m


def _elu(x):
    # ELU(alpha=1).  Clamp before exp so the discarded branch never sees large
    # positive x (no inf in masked lanes).  exp(min(x,0)) - 1 vs expm1 differs
    # by ~1 ulp of 1.0, far inside the test tolerance, and exp has a
    # guaranteed Mosaic/EUP lowering.
    return jnp.where(x > 0, x, jnp.exp(jnp.minimum(x, 0.0)) - 1.0)


def _make_critic_kernel(state_dim, hidden_dim, region_rows):
    """Kernel over one lane-tile of the batch.

    Refs:
      x_ref : (TB, STATE_DIM)       -- native batch-major input tile
      p_ref : (2*region_rows, 128)  -- packed parameter slab (pack_critic_params)
      o_ref : (1, TB)               -- lane-dense output row
    """
    r, h_dim, s_dim = region_rows, hidden_dim, state_dim

    def kernel(x_ref, p_ref, o_ref):
        # Static, sublane-aligned views of the compact parameter slab.
        w1 = p_ref[0:h_dim, 0:s_dim]                  # (H, S)  fc1.weight
        b1 = p_ref[0:h_dim, s_dim:s_dim + 1]          # (H, 1)  fc1.bias
        b2 = p_ref[0:h_dim, s_dim + 1:s_dim + 2]      # (H, 1)  fc2.bias
        w3 = p_ref[0:h_dim, s_dim + 2:s_dim + 3]      # (H, 1)  out.weight^T
        b3 = p_ref[0:1, s_dim + 3:s_dim + 4]          # (1, 1)  out.bias
        w2 = p_ref[r:r + h_dim, 0:h_dim]              # (H, H)  fc2.weight

        x = x_ref[...]                                # (TB, S)

        # fc1 + ELU.  The (TB, S) -> (S, TB) transpose happens in-kernel so
        # the wrapper never materializes x.T in HBM; compute stays
        # feature-major so every intermediate and the output are lane-dense.
        h = jnp.dot(w1, x.T, preferred_element_type=jnp.float32) + b1
        h = _elu(h)
        # fc2 + ELU
        h = jnp.dot(w2, h, preferred_element_type=jnp.float32) + b2
        h = _elu(h)
        # out layer (HIDDEN -> 1): VPU multiply + XLU sublane reduce,
        # avoiding an N=1 MXU pass on the latency-critical chain.
        o_ref[...] = jnp.sum(h * w3, axis=0, keepdims=True) + b3   # (1, TB)

    return kernel


def pack_critic_params(params, state_dim, hidden_dim):
    """Pack (w1, b1, w2, b2, w3, b3) (torch layout) into ONE compact slab.

    Slab layout, shape (2*ceil(H,8), roundup(max(S+4, H), 128)) f32:
      rows [0, H)    cols [0, S) : fc1.weight  (H, S)
                     col  S      : fc1.bias    (H,)
                     col  S+1    : fc2.bias    (H,)
                     col  S+2    : out.weight^T(H,)
      row  0         col  S+3    : out.bias    scalar
      rows [r, r+H)  cols [0, H) : fc2.weight  (H, H)
    """
    w1, b1, w2, b2, w3, b3 = params
    r = _round_up(hidden_dim, 8)
    lanes = _round_up(max(state_dim + 4, hidden_dim), 128)
    slab = jnp.zeros((2 * r, lanes), jnp.float32)
    slab = slab.at[0:hidden_dim, 0:state_dim].set(w1)
    slab = slab.at[0:hidden_dim, state_dim].set(b1)
    slab = slab.at[0:hidden_dim, state_dim + 1].set(b2)
    slab = slab.at[0:hidden_dim, state_dim + 2].set(w3[0])
    slab = slab.at[0, state_dim + 3].set(b3[0])
    slab = slab.at[r:r + hidden_dim, 0:hidden_dim].set(w2)
    return slab


def _choose_batch_tile(bp):
    """bp = padded batch (multiple of 128).  Largest lane tile that divides bp,
    capped at 2048 (per-step overhead amortization; VMEM is a non-issue), and
    capped at bp/2 once bp >= 256 so the 'parallel' grid has >= 2 steps to
    shard across v7x's two TensorCores (no-op on single-TC v5e/v6e)."""
    if bp <= 128:
        return bp
    cap = min(2048, bp // 2)
    cap = max(128, (cap // 128) * 128)
    c = cap
    while c >= 128:
        if bp % c == 0:
            return c
        c -= 128
    return 128


def critic_forward(x, packed_params, state_dim, hidden_dim):
    """x: (B, STATE_DIM) f32; packed_params: slab from pack_critic_params.

    Returns (B, 1) f32, matching CriticNet.forward.
    """
    B, s = x.shape
    assert s == state_dim
    rows, lanes = packed_params.shape
    region_rows = rows // 2

    # Pad the batch to a multiple of 128 so every tile is (8,128)-aligned,
    # stores are unmasked, and the pipeline keeps running for ragged batches.
    bp = _round_up(max(B, 128), 128)
    if bp != B:
        x = jnp.pad(x, ((0, bp - B), (0, 0)))

    tb = _choose_batch_tile(bp)
    grid = (bp // tb,)

    kernel = _make_critic_kernel(state_dim, hidden_dim, region_rows)

    # Advisory scheduler hint (flops / transcendentals / bytes).
    cost = pl.CostEstimate(
        flops=int(bp * (2 * state_dim * hidden_dim
                        + 2 * hidden_dim * hidden_dim + 2 * hidden_dim)),
        transcendentals=int(bp * 2 * hidden_dim),
        bytes_accessed=int(4 * (bp * state_dim + bp + rows * lanes)),
    )

    out = pl.pallas_call(
        kernel,
        out_shape=jax.ShapeDtypeStruct((1, bp), jnp.float32),
        grid_spec=pltpu.PrefetchScalarGridSpec(
            num_scalar_prefetch=0,
            grid=grid,
            in_specs=[
                # Native (B, S) layout: one lane-tile of the batch per step.
                pl.BlockSpec((tb, state_dim), lambda i: (i, 0)),
                # Parameter slab: constant block index -> DMA'd once, stays
                # VMEM-resident across all batch tiles.
                pl.BlockSpec((rows, lanes), lambda i: (0, 0)),
            ],
            out_specs=pl.BlockSpec((1, tb), lambda i: (0, i)),
        ),
        compiler_params=pltpu.CompilerParams(
            # Batch tiles are independent -> shards across both TCs on v7x;
            # harmless on single-TC v5e/v6e.
            dimension_semantics=("parallel",),
        ),
        cost_estimate=cost,
    )(x, packed_params)

    return out[0, :B].reshape(B, 1)


def init_critic_params(key, state_dim, hidden_dim, init_w):
    """Replicates CriticNet.__init__ initialization, torch (out, in) layout.

    fanin_init uses size[0] == out_features as fan-in (as in the source).
    Biases keep PyTorch Linear default: U(-1/sqrt(in_features), 1/sqrt(in_features)).
    out.weight ~ Normal(mean=-init_w, std=init_w) (torch .normal_(-init_w, init_w)).
    """
    ks = jax.random.split(key, 6)

    v1 = 1.0 / math.sqrt(hidden_dim)
    w1 = jax.random.uniform(ks[0], (hidden_dim, state_dim), jnp.float32, -v1, v1)
    bb1 = 1.0 / math.sqrt(state_dim)
    b1 = jax.random.uniform(ks[1], (hidden_dim,), jnp.float32, -bb1, bb1)

    v2 = 1.0 / math.sqrt(hidden_dim)
    w2 = jax.random.uniform(ks[2], (hidden_dim, hidden_dim), jnp.float32, -v2, v2)
    bb2 = 1.0 / math.sqrt(hidden_dim)
    b2 = jax.random.uniform(ks[3], (hidden_dim,), jnp.float32, -bb2, bb2)

    w3 = -init_w + init_w * jax.random.normal(ks[4], (1, hidden_dim), jnp.float32)
    bb3 = 1.0 / math.sqrt(hidden_dim)
    b3 = jax.random.uniform(ks[5], (1,), jnp.float32, -bb3, bb3)

    return (w1, b1, w2, b2, w3, b3)


def critic_reference(x, params):
    """Pure-JAX reference of the PyTorch forward pass (torch-layout params)."""
    w1, b1, w2, b2, w3, b3 = params
    h = jax.nn.elu(x @ w1.T + b1)
    h = jax.nn.elu(h @ w2.T + b2)
    return h @ w3.T + b3


if __name__ == "__main__":
    STATE_DIM, HIDDEN_DIM, INIT_W = 16, 32, 0.003

    key = jax.random.PRNGKey(0)
    k_params, k_x1, k_x2 = jax.random.split(key, 3)
    params = init_critic_params(k_params, STATE_DIM, HIDDEN_DIM, INIT_W)
    packed = pack_critic_params(params, STATE_DIM, HIDDEN_DIM)  # pack once

    # Small (module-scale) batch.
    x = jax.random.normal(k_x1, (8, STATE_DIM), jnp.float32)
    out = jax.block_until_ready(critic_forward(x, packed, STATE_DIM, HIDDEN_DIM))
    ref = critic_reference(x, params)
    assert out.shape == (8, 1), out.shape
    assert jnp.allclose(out, ref, atol=1e-5, rtol=1e-5), (out, ref)

    # Non-multiple-of-128 batch: exercises padding + multi-step 'parallel' grid.
    x2 = jax.random.normal(k_x2, (300, STATE_DIM), jnp.float32)
    out2 = jax.block_until_ready(critic_forward(x2, packed, STATE_DIM, HIDDEN_DIM))
    ref2 = critic_reference(x2, params)
    assert out2.shape == (300, 1), out2.shape
    assert jnp.allclose(out2, ref2, atol=1e-5, rtol=1e-5), (out2, ref2)

    print("KERNEL_OK")
</pallas_src>

<mosaic_0001>
module attributes {stable_mosaic.version = 11 : i64} {
  func.func @kernel(%arg0: i32, %arg1: memref<128x16xf32, #tpu.memory_space<vmem>>, %arg2: memref<64x128xf32, #tpu.memory_space<vmem>>, %arg3: memref<1x128xf32, #tpu.memory_space<vmem>>) attributes {dimension_semantics = [#tpu.dimension_semantics<parallel>], iteration_bounds = array<i64: 1>, scalar_prefetch = 0 : i64, scratch_operands = 0 : i64, tpu.core_type = #tpu.core_type<tc>, window_params = [{transform_indices = @transform_0, window_bounds = array<i64: 128, 16>}, {pipeline_mode = #tpu.pipeline_mode<synchronous>, transform_indices = @transform_1, window_bounds = array<i64: 64, 128>}, {transform_indices = @transform_2, window_bounds = array<i64: 1, 128>}]} {
    %c0 = arith.constant 0 : index
    %c0_0 = arith.constant 0 : index
    %0 = vector.load %arg2[%c0, %c0_0] : memref<64x128xf32, #tpu.memory_space<vmem>>, vector<32x16xf32>
    %c0_1 = arith.constant 0 : index
    %c16 = arith.constant 16 : index
    %1 = vector.load %arg2[%c0_1, %c16] : memref<64x128xf32, #tpu.memory_space<vmem>>, vector<32x1xf32>
    %c0_2 = arith.constant 0 : index
    %c17 = arith.constant 17 : index
    %2 = vector.load %arg2[%c0_2, %c17] : memref<64x128xf32, #tpu.memory_space<vmem>>, vector<32x1xf32>
    %c0_3 = arith.constant 0 : index
    %c18 = arith.constant 18 : index
    %3 = vector.load %arg2[%c0_3, %c18] : memref<64x128xf32, #tpu.memory_space<vmem>>, vector<32x1xf32>
    %c0_4 = arith.constant 0 : index
    %c19 = arith.constant 19 : index
    %4 = vector.load %arg2[%c0_4, %c19] : memref<64x128xf32, #tpu.memory_space<vmem>>, vector<1x1xf32>
    %c32 = arith.constant 32 : index
    %c0_5 = arith.constant 0 : index
    %5 = vector.load %arg2[%c32, %c0_5] : memref<64x128xf32, #tpu.memory_space<vmem>>, vector<32x32xf32>
    %c0_6 = arith.constant 0 : index
    %c0_7 = arith.constant 0 : index
    %6 = vector.load %arg1[%c0_6, %c0_7] : memref<128x16xf32, #tpu.memory_space<vmem>>, vector<128x16xf32>
    %7 = tpu.transpose %6, [1, 0] : vector<128x16xf32> -> vector<16x128xf32>
    %cst = arith.constant dense<0.000000e+00> : vector<32x128xf32>
    %8 = tpu.matmul %0, %7, %cst {dimension_numbers = #tpu.dot_dimension_numbers<[1], [0], [0], [1], [0, 0, 1, 1], [], []>} : vector<32x16xf32>, vector<16x128xf32>, vector<32x128xf32> -> vector<32x128xf32>
    %9 = vector.broadcast %1 : vector<32x1xf32> to vector<32x128xf32>
    %10 = arith.addf %8, %9 : vector<32x128xf32>
    %cst_8 = arith.constant 0.000000e+00 : f32
    %11 = vector.broadcast %cst_8 : f32 to vector<32x128xf32>
    %12 = arith.cmpf ogt, %10, %11 : vector<32x128xf32>
    %cst_9 = arith.constant 0.000000e+00 : f32
    %13 = vector.broadcast %cst_9 : f32 to vector<32x128xf32>
    %14 = arith.minimumf %10, %13 : vector<32x128xf32>
    %15 = math.exp %14 : vector<32x128xf32>
    %cst_10 = arith.constant 1.000000e+00 : f32
    %16 = vector.broadcast %cst_10 : f32 to vector<32x128xf32>
    %17 = arith.subf %15, %16 : vector<32x128xf32>
    %18 = arith.select %12, %10, %17 : vector<32x128xi1>, vector<32x128xf32>
    %cst_11 = arith.constant dense<0.000000e+00> : vector<32x128xf32>
    %19 = tpu.matmul %5, %18, %cst_11 {dimension_numbers = #tpu.dot_dimension_numbers<[1], [0], [0], [1], [0, 0, 1, 1], [], []>} : vector<32x32xf32>, vector<32x128xf32>, vector<32x128xf32> -> vector<32x128xf32>
    %20 = vector.broadcast %2 : vector<32x1xf32> to vector<32x128xf32>
    %21 = arith.addf %19, %20 : vector<32x128xf32>
    %cst_12 = arith.constant 0.000000e+00 : f32
    %22 = vector.broadcast %cst_12 : f32 to vector<32x128xf32>
    %23 = arith.cmpf ogt, %21, %22 : vector<32x128xf32>
    %cst_13 = arith.constant 0.000000e+00 : f32
    %24 = vector.broadcast %cst_13 : f32 to vector<32x128xf32>
    %25 = arith.minimumf %21, %24 : vector<32x128xf32>
    %26 = math.exp %25 : vector<32x128xf32>
    %cst_14 = arith.constant 1.000000e+00 : f32
    %27 = vector.broadcast %cst_14 : f32 to vector<32x128xf32>
    %28 = arith.subf %26, %27 : vector<32x128xf32>
    %29 = arith.select %23, %21, %28 : vector<32x128xi1>, vector<32x128xf32>
    %30 = vector.broadcast %3 : vector<32x1xf32> to vector<32x128xf32>
    %31 = arith.mulf %29, %30 : vector<32x128xf32>
    %cst_15 = arith.constant dense<0.000000e+00> : vector<128xf32>
    %32 = vector.multi_reduction <add>, %31, %cst_15 [0] : vector<32x128xf32> to vector<128xf32>
    %33 = vector.shape_cast %32 : vector<128xf32> to vector<1x128xf32>
    %34 = vector.broadcast %4 : vector<1x1xf32> to vector<1x128xf32>
    %35 = arith.addf %33, %34 : vector<1x128xf32>
    %c0_16 = arith.constant 0 : index
    %c0_17 = arith.constant 0 : index
    %36 = vector.load %arg3[%c0_16, %c0_17] : memref<1x128xf32, #tpu.memory_space<vmem>>, vector<1x128xf32>
    tpu.vector_store %arg3[%c0_16, %c0_17], %35 {strides = array<i32>} : memref<1x128xf32, #tpu.memory_space<vmem>>, vector<1x128xf32>,
    return
  }
  func.func @transform_0(%arg0: i32) -> (i32, i32) {
    %c0_i32 = arith.constant 0 : i32
    %c0_i32_0 = arith.constant 0 : i32
    return %arg0, %c0_i32 : i32, i32
  }
  func.func @transform_1(%arg0: i32) -> (i32, i32) {
    %c0_i32 = arith.constant 0 : i32
    %c0_i32_0 = arith.constant 0 : i32
    %c0_i32_1 = arith.constant 0 : i32
    return %c0_i32, %c0_i32_0 : i32, i32
  }
  func.func @transform_2(%arg0: i32) -> (i32, i32) {
    %c0_i32 = arith.constant 0 : i32
    %c0_i32_0 = arith.constant 0 : i32
    return %c0_i32, %arg0 : i32, i32
  }
}

</mosaic_0001>

<bundles_post_ra>
// kernel: tpu_custom_call.1
= control target key start
LH: loop header
LB: loop body
LE: loop exit
PB: predicated region body
PF: predicated region fallthrough
CT: control target
= control target key end

     0   :  { %vm57_vm0 = vcmask 130048   ;;  %v631_v6 = vmov 16   ;;  %s784_s0 = inlined_call_operand.vmem [shape: f32[128,16], index: 0, kind: input, shape index: {}]   ;;  %s785_s1 = inlined_call_operand.vmem [shape: f32[64,128], index: 1, kind: input, shape index: {}]   ;;  %s786_s2 = inlined_call_operand.hbm [shape: f32[1,128], index: 2, kind: output, shape index: {}]  }
   0x1   :  { %v21_v0 = vld [vmem:[%s784_s0] sm:$0xff]  ;;  %v22_v1 = vld [vmem:[%s784_s0 + $0x8] sm:$0xff]  ;;  %v23_v2 = vld [vmem:[%s784_s0 + $0x10] sm:$0xff]  ;;  %584 = vset.pattern.permute.xlu0 %v631_v6  ;;  %585 = vset.pattern.permute.xlu1 %v631_v6 }
   0x2   :  { %v523_v3 = vpack.c.bf16 %v22_v1, %v21_v0  ;;  %vm662_vm1 = vmpackc.low %vm57_vm0, %vm57_vm0  ;;  %v24_v5 = vld [vmem:[%s784_s0 + $0x18] sm:$0xff]  ;;  %v12_v8 = vld [vmem:[%s785_s1] sm:$0xff] }
   0x3   :  { %v529_v7 = vpack.c.bf16 %v24_v5, %v23_v2  ;;  %v25_v9 = vld [vmem:[%s784_s0 + $0x20] sm:$0xff]  ;;  %v26_v10 = vld [vmem:[%s784_s0 + $0x28] sm:$0xff]  ;;  %503 = vmatprep.mubr.msk.f32.mxu0 %vm57_vm0, %v12_v8  ;;  %v14_v11 = vld [vmem:[%s785_s1 + $0x10] sm:$0xff]  ;;  %39 = vperm.xlu0 %584, %v12_v8  }
   0x4   :  { %525 = vmatprep.subr.msk.bf16.mxu0 %vm662_vm1, %v523_v3  ;;  %49 = vperm.xlu1 %585, %v14_v11  }
   0x5   :  { %528 = vmatpush3.bf16.xpose.msk.msra.mxu0 %vm662_vm1, %v523_v3 }
   0x6   :  { %531 = vmatprep.subr.msk.bf16.mxu0 %vm662_vm1, %v529_v7 }
   0x7   :  { %7 = vsyncpa [#allocation3], 0  ;;  %v535_v12 = vpack.c.bf16 %v26_v10, %v25_v9  ;;  %v13_v13 = vld [vmem:[%s785_s1 + $0x8] sm:$0xff]  ;;  %v15_v14 = vld [vmem:[%s785_s1 + $0x18] sm:$0xff]  ;;  %vm239_vm2 = vcmask 261120   ;;  %v632_v31 = vmov 17  }
   0x8   :  { %44 = vperm.xlu0 %584, %v13_v13   ;;  %54 = vperm.xlu1 %585, %v15_v14   ;;  %v27_v15 = vld [vmem:[%s784_s0 + $0x30] sm:$0xff]  ;;  %v28_v16 = vld [vmem:[%s784_s0 + $0x38] sm:$0xff]  ;;  %v29_v18 = vld [vmem:[%s784_s0 + $0x40] sm:$0xff]  ;;  %v633_v32 = vmov 18   ;;  %v634_v34 = vmov 19  }
   0x9   :  { %v541_v17 = vpack.c.bf16 %v28_v16, %v27_v15  ;;  %v30_v19 = vld [vmem:[%s784_s0 + $0x48] sm:$0xff]  ;;  %v31_v21 = vld [vmem:[%s784_s0 + $0x50] sm:$0xff]  ;;  %v32_v22 = vld [vmem:[%s784_s0 + $0x58] sm:$0xff] }
   0xa   :  { %v547_v20 = vpack.c.bf16 %v30_v19, %v29_v18  ;;  %v553_v23 = vpack.c.bf16 %v32_v22, %v31_v21  ;;  %v33_v24 = vld [vmem:[%s784_s0 + $0x60] sm:$0xff]  ;;  %v34_v25 = vld [vmem:[%s784_s0 + $0x68] sm:$0xff]  ;;  %v35_v27 = vld [vmem:[%s784_s0 + $0x70] sm:$0xff] }
   0xb   :  { %v559_v26 = vpack.c.bf16 %v34_v25, %v33_v24  ;;  %v36_v28 = vld [vmem:[%s784_s0 + $0x78] sm:$0xff]  ;;  %v17_v30 = vld [vmem:[%s785_s1 + $0x20] sm:$0xff]  ;;  %v18_v5 = vld [vmem:[%s785_s1 + $0x28] sm:$0xff] }
   0xc   :  { %v565_v29 = vpack.c.bf16 %v36_v28, %v35_v27  ;;  %517 = vmatprep.mubr.msk.f32.mxu1 %vm239_vm2, %v17_v30  ;;  %587 = vset.pattern.permute.xlu1 %v632_v31  ;;  %v16_v33 = vld [vmem:[%s785_s1] sm:$0x1]  ;;  %v19_v6 = vld [vmem:[%s785_s1 + $0x30] sm:$0xff] }
   0xd   :  { %534 = vmatpush3.bf16.xpose.msk.msra.mxu0 %vm662_vm1, %v529_v7  ;;  %586 = vset.pattern.permute.xlu0 %v632_v31  ;;  %v20_v7 = vld [vmem:[%s785_s1 + $0x38] sm:$0xff]  ;;  %s635_s1 = smov [#allocation2]  }
   0xe   :  { %537 = vmatprep.subr.msk.bf16.mxu0 %vm662_vm1, %v535_v12  ;;  %228 = vperm.xlu1 %587, %v13_v13   ;;  %s403_s30 = sshll.u32 %s635_s1, 4  ;;  %s404_s30 = int_to_ptr.vmem [resolvable:$true] %s403_s30 }
   0xf   :  { %224 = vperm.xlu0 %586, %v12_v8   ;;  %s607_s3 = scalar_lea.vmem %s404_s30, 16  ;;  %s611_s4 = scalar_lea.vmem %s404_s30, 32 }
  0x10   :  { %p608_p0 = scmp.ne.s32.totalorder %s404_s30, %s607_s3  ;;  %p612_p1 = scmp.lt.s32.totalorder %s404_s30, %s404_s30 }
  0x11   :  { %p613_p2 = scmp.lt.s32.totalorder %s611_s4, %s607_s3 }
  0x12   :  { %232 = vperm.xlu1 %587, %v14_v11  }
  0x13   :  { %236 = vperm.xlu0 %586, %v15_v14   ;;  %p614_p3 = por %p613_p2, %p612_p1 }
  0x15   :  { %540 = vmatpush3.bf16.xpose.msk.msra.mxu0 %vm662_vm1, %v535_v12  ;;  %p615_p4 = pnand %p614_p3, %p608_p0 }
  0x16   :  { %543 = vmatprep.subr.msk.bf16.mxu0 %vm662_vm1, %v541_v17  ;;  %588 = vset.pattern.permute.xlu1 %v633_v32 }
  0x17   :  { %589 = vset.pattern.permute.xlu0 %v633_v32  ;;  %362 = vperm.xlu1 %588, %v12_v8  }
  0x18   :  { %366 = vperm.xlu0 %589, %v13_v13  }
  0x1b   :  { %370 = vperm.xlu1 %588, %v14_v11  }
  0x1c   :  { %590 = vset.pattern.permute.xlu0 %v634_v34 }
  0x1d   :  { %546 = vmatpush3.bf16.xpose.msk.msra.mxu0 %vm662_vm1, %v541_v17  ;;  %392 = vperm.xlu0 %590, %v16_v33  }
  0x1e   :  { %549 = vmatprep.subr.msk.bf16.mxu0 %vm662_vm1, %v547_v20 }
  0x1f   :  { %374 = vperm.xlu1 %588, %v15_v14  }
  0x25   :  { %552 = vmatpush3.bf16.xpose.msk.msra.mxu0 %vm662_vm1, %v547_v20 }
  0x26   :  { %555 = vmatprep.subr.msk.bf16.mxu0 %vm662_vm1, %v553_v23 }
  0x2d   :  { %558 = vmatpush3.bf16.xpose.msk.msra.mxu0 %vm662_vm1, %v553_v23 }
  0x2e   :  { %561 = vmatprep.subr.msk.bf16.mxu0 %vm662_vm1, %v559_v26 }
  0x35   :  { %564 = vmatpush3.bf16.xpose.msk.msra.mxu0 %vm662_vm1, %v559_v26 }
  0x36   :  { %567 = vmatprep.subr.msk.bf16.mxu0 %vm662_vm1, %v565_v29 }
  0x3d   :  { %570 = vmatpush3.bf16.xpose.msk.msra.mxu0 %vm662_vm1, %v565_v29 }
  0x44   :  { %504 = vmatmul.mubr.msk.f32.vlgmr.msra.gmra.mrb[0].mxu0 %vm57_vm0, %v13_v13 }
  0x45   :  { %506 = vmatprep.mubr.msk.f32.mxu0 %vm57_vm0, %v14_v11 }
  0x48   :  { %507 = vmatmul.mubr.msk.f32.gmra.mrb[2].mxu0 %vm57_vm0, %v15_v14 }
  0x82   :  { %v40_v35 = vpop.permute.xlu0 %39 }
  0x83   :  { %v50_v36 = vpop.permute.xlu1 %49 }
  0x87   :  { %v45_v37 = vpop.permute.xlu0 %44  ;;  %v55_v43 = vpop.permute.xlu1 %54 }
  0x8d   :  { %v229_v9 = vpop.permute.xlu1 %228 }
  0x8e   :  { %v225_v8 = vpop.permute.xlu0 %224 }
  0x91   :  { %v233_v19 = vpop.permute.xlu1 %232 }
  0x92   :  { %v237_v14 = vpop.permute.xlu0 %236 }
  0x96   :  { %v363_v28 = vpop.permute.xlu1 %362 }
  0x97   :  { %v367_v31 = vpop.permute.xlu0 %366 }
 0x117   :  { %v505_v38 = vpop.f32.mrb[0].mxu0 }
 0x118   :  { %v186_v39 = vadd.f32 %v505_v38, %v45_v37  ;;  %v180_v40 = vpop.f32.mrb[1].mxu0  ;;  %v371_v37 = vpop.permute.xlu1 %370 }
 0x119   :  { %v181_v41 = vadd.f32 %v180_v40, %v40_v35 }
 0x11a   :  { %v204_v42 = vmin.f32 %v186_v39, 0.0  ;;  %vm200_vm3 = vcmp.gt.f32.partialorder %v186_v39, 0.0 }
 0x11b   :  { %v203_v44 = vmin.f32 %v181_v41, 0.0  ;;  %v508_v45 = vpop.f32.mrb[2].mxu0  ;;  %vm199_vm4 = vcmp.gt.f32.partialorder %v181_v41, 0.0 }
 0x11c   :  { %v209_v46 = vmul.f32 1.442695, %v204_v42  ;;  %v196_v47 = vadd.f32 %v508_v45, %v55_v43  ;;  %v190_v48 = vpop.f32.mrb[3].mxu0 }
 0x11d   :  { %v207_v49 = vmul.f32 1.442695, %v203_v44  ;;  %v191_v50 = vadd.f32 %v190_v48, %v50_v36 }
 0x11e   :  { %591 = vpow2.f32 %v209_v46  ;;  %v206_v51 = vmin.f32 %v196_v47, 0.0  ;;  %vm202_vm5 = vcmp.gt.f32.partialorder %v196_v47, 0.0 }
 0x11f   :  { %593 = vpow2.f32 %v207_v49  ;;  %v205_v52 = vmin.f32 %v191_v50, 0.0  ;;  %vm201_vm6 = vcmp.gt.f32.partialorder %v191_v50, 0.0 }
 0x120   :  { %v213_v53 = vmul.f32 1.442695, %v206_v51 }
 0x121   :  { %v211_v54 = vmul.f32 1.442695, %v205_v52 }
 0x122   :  { %595 = vpow2.f32 %v213_v53 }
 0x123   :  { %597 = vpow2.f32 %v211_v54 }
 0x128   :  { %v592_v55 = vpop.eup %591 }
 0x129   :  { %v594_v56 = vpop.eup %593  ;;  %v432_v57 = vadd.f32 -1.0, %v592_v55 }
 0x12a   :  { %v431_v58 = vadd.f32 -1.0, %v594_v56  ;;  %v393_v56 = vpop.permute.xlu0 %392 }
 0x12b   :  { %v220_v59 = vsel %vm200_vm3, %v186_v39, %v432_v57 }
 0x12c   :  { %v596_v60 = vpop.eup %595  ;;  %v219_v61 = vsel %vm199_vm4, %v181_v41, %v431_v58 }
 0x12d   :  { %v598_v62 = vpop.eup %597  ;;  %v434_v63 = vadd.f32 -1.0, %v596_v60  ;;  %v571_v0 = vpack.c.bf16 %v220_v59, %v219_v61 }
 0x12e   :  { %v433_v1 = vadd.f32 -1.0, %v598_v62 }
 0x12f   :  { %572 = vmatprep.subr.bf16.mxu1 %v571_v0  ;;  %v222_v2 = vsel %vm202_vm5, %v196_v47, %v434_v63  ;;  %v375_v47 = vpop.permute.xlu1 %374 }
 0x130   :  { %574 = vmatpush3.bf16.msra.mxu1 %v571_v0  ;;  %v221_v3 = vsel %vm201_vm6, %v191_v50, %v433_v1 }
 0x131   :  { %v575_v4 = vpack.c.bf16 %v222_v2, %v221_v3 }
 0x133   :  { %576 = vmatprep.subr.bf16.mxu1 %v575_v4 }
 0x134   :  { %578 = vmatpush3.bf16.msra.mxu1 %v575_v4 }
 0x137   :  { %518 = vmatmul.mubr.msk.f32.vlgmr.msra.gmra.mrb[0].mxu1 %vm239_vm2, %v18_v5 }
 0x138   :  { %520 = vmatprep.mubr.msk.f32.mxu1 %vm239_vm2, %v19_v6 }
 0x13b   :  { %521 = vmatmul.mubr.msk.f32.gmra.mrb[2].mxu1 %vm239_vm2, %v20_v7 }
 0x20a   :  { %v519_v10 = vpop.f32.mrb[0].mxu1 }
 0x20b   :  { %v324_v11 = vadd.f32 %v519_v10, %v229_v9  ;;  %v318_v12 = vpop.f32.mrb[1].mxu1 }
 0x20c   :  { %v319_v13 = vadd.f32 %v318_v12, %v225_v8 }
 0x20d   :  { %v342_v15 = vmin.f32 %v324_v11, 0.0  ;;  %vm338_vm7 = vcmp.gt.f32.partialorder %v324_v11, 0.0 }
 0x20e   :  { %v341_v16 = vmin.f32 %v319_v13, 0.0  ;;  %v522_v17 = vpop.f32.mrb[2].mxu1  ;;  %vm337_vm8 = vcmp.gt.f32.partialorder %v319_v13, 0.0 }
 0x20f   :  { %v347_v18 = vmul.f32 1.442695, %v342_v15  ;;  %v334_v20 = vadd.f32 %v522_v17, %v237_v14  ;;  %v328_v21 = vpop.f32.mrb[3].mxu1 }
 0x210   :  { %v345_v22 = vmul.f32 1.442695, %v341_v16  ;;  %v329_v23 = vadd.f32 %v328_v21, %v233_v19 }
 0x211   :  { %599 = vpow2.f32 %v347_v18  ;;  %v344_v24 = vmin.f32 %v334_v20, 0.0  ;;  %vm340_vm10 = vcmp.gt.f32.partialorder %v334_v20, 0.0 }
 0x212   :  { %601 = vpow2.f32 %v345_v22  ;;  %v343_v25 = vmin.f32 %v329_v23, 0.0  ;;  %vm339_vm9 = vcmp.gt.f32.partialorder %v329_v23, 0.0 }
 0x213   :  { %v351_v26 = vmul.f32 1.442695, %v344_v24 }
 0x214   :  { %v349_v27 = vmul.f32 1.442695, %v343_v25 }
 0x215   :  { %603 = vpow2.f32 %v351_v26 }
 0x216   :  { %605 = vpow2.f32 %v349_v27 }
 0x21b   :  { %v600_v29 = vpop.eup %599 }
 0x21c   :  { %v602_v30 = vpop.eup %601  ;;  %v440_v32 = vadd.f32 -1.0, %v600_v29 }
 0x21d   :  { %v439_v33 = vadd.f32 -1.0, %v602_v30 }
 0x21e   :  { %v358_v34 = vsel %vm338_vm7, %v324_v11, %v440_v32 }
 0x21f   :  { %v604_v35 = vpop.eup %603  ;;  %v357_v36 = vsel %vm337_vm8, %v319_v13, %v439_v33  ;;  %v378_v38 = vmul.f32 %v367_v31, %v358_v34 }
 0x220   :  { %v606_v39 = vpop.eup %605  ;;  %v377_v40 = vmul.f32 %v363_v28, %v357_v36  ;;  %v442_v41 = vadd.f32 -1.0, %v604_v35 }
 0x221   :  { %v441_v42 = vadd.f32 -1.0, %v606_v39 }
 0x222   :  { %v381_v43 = vadd.f32 %v378_v38, %v377_v40  ;;  %v360_v45 = vsel %vm340_vm10, %v334_v20, %v442_v41 }
 0x223   :  { %v359_v44 = vsel %vm339_vm9, %v329_v23, %v441_v42  ;;  %v380_v48 = vmul.f32 %v375_v47, %v360_v45 }
 0x224   :  { %v379_v46 = vmul.f32 %v371_v37, %v359_v44 }
 0x226   :  { %v382_v49 = vadd.f32 %v381_v43, %v379_v46 }
 0x228   :  { %v383_v50 = vadd.f32 %v382_v49, %v380_v48 }
 0x22a   :  { %v384_v51 = vrot.slane %v383_v50, 4 }
 0x22c   :  { %v385_v52 = vadd.f32 %v384_v51, %v383_v50 }
 0x22e   :  { %v386_v53 = vrot.slane %v385_v52, 2 }
 0x230   :  { %v387_v54 = vadd.f32 %v386_v53, %v385_v52 }
 0x232   :  { %v388_v55 = vrot.slane %v387_v54, 1 }
 0x234   :  { %v389_v57 = vadd.f32 %v388_v55, %v387_v54 }
 0x236   :  { %v395_v58 = vadd.f32 %v393_v56, %v389_v57 }
 0x238   :  { %396 = vst [vmem:[#allocation2] sm:$0x1] %v395_v58 }
 0x239   :  { %618 = shalt.err (!%p615_p4)
}
 0x23a   :  { %s619_s7 = scalar_lea.hbm %s786_s2, 16 }
 0x23b   :  { %p620_p5 = scmp.ne.s32.totalorder %s786_s2, %s619_s7  ;;  %p623_p6 = scmp.lt.u32.totalorder %s619_s7, %s786_s2 }
 0x23d   :  { %p625_p7 = pnand %p623_p6, %p620_p5 }
 0x23f   :  { %628 = shalt.err (!%p625_p7)
}
 0x240   :  { %406 = dma.vmem_to_hbm [thread:$0]  %s404_s30, 16, %s786_s2, [#allocation3]  }
 0x241   :  { %629 = dma.done.wait [#allocation3], 16  }
 0x242   :  { %630 = vsyncadd [#allocation3], 4294967280 }
 0x243   :  { %410 = vsyncpa [#allocation3], 1 }

</bundles_post_ra>
